<compile_context>
chip_gen: v5e
topology: v5e:2x2
jax: 0.10.0
libtpu: 0.0.40
codegen_flags: <defaults>
</compile_context>

<pallas_src>
import jax
import jax.numpy as jnp
from jax.experimental import pallas as pl
from jax.experimental.pallas import tpu as pltpu

_HI = jax.lax.Precision.HIGHEST


def _round_up(v, m):
    return -(-v // m) * m


def _mm(a, b):
    return jnp.matmul(a, b, precision=_HI)


# ----------------------------- fused Pallas kernel -----------------------------

def _make_kernel(dims):
    """Build the 2-dot fused kernel; all slice offsets are static Python ints."""
    in_pad = dims["in_pad"]
    lanes = dims["lanes"]
    off_b1 = dims["off_b1"]
    off_w2 = dims["off_w2"]
    off_b2 = dims["off_b2"]

    def kernel(x_ref, p_ref, o_ref):
        # Static, tile-aligned slices of the parameter slab (free).
        w1 = p_ref[0:in_pad, :]                       # (in_pad, lanes)  block-diag first layer
        b1 = p_ref[off_b1:off_b1 + 1, :].astype(jnp.float32)
        w2 = p_ref[off_w2:off_w2 + lanes, :]          # (lanes, lanes)   folded tail
        b2 = p_ref[off_b2:off_b2 + 1, :].astype(jnp.float32)

        # dot 1: both branches' first Linear at once (128-lane dense RHS).
        h = jnp.dot(x_ref[...], w1, preferred_element_type=jnp.float32)
        h = jnp.maximum(h + b1, 0.0)                  # the model's only nonlinearity
        # dot 2: folded (l2 . fc . merge . merge-fc . final-fc) for both branches.
        y = jnp.dot(h.astype(jnp.bfloat16), w2, preferred_element_type=jnp.float32)
        o_ref[...] = (y + b2).astype(o_ref.dtype)

    return kernel


def merge_model_forward(xlist, folded):
    """MergeModel.forward — one fused pallas_call over the pre-folded slab."""
    xa, xb = xlist
    n = xa.shape[0]
    dims = folded["dims"]
    slab = folded["slab"]

    n_pad = max(8, _round_up(n, 8))                   # sublane-tile friendly batch
    x = jnp.concatenate([xa, xb], axis=1)             # (n, in_a+in_b)
    x = jnp.pad(x, ((0, n_pad - n), (0, dims["in_pad"] - dims["in_cat"])))
    x = x.astype(jnp.bfloat16)

    y = pl.pallas_call(
        _make_kernel(dims),
        out_shape=jax.ShapeDtypeStruct((n_pad, dims["lanes"]), jnp.float32),
        grid=(1,),
        in_specs=[
            pl.BlockSpec(x.shape, lambda i: (0, 0)),
            pl.BlockSpec(slab.shape, lambda i: (0, 0)),
        ],
        out_specs=pl.BlockSpec((n_pad, dims["lanes"]), lambda i: (0, 0)),
        compiler_params=pltpu.CompilerParams(
            dimension_semantics=("arbitrary",)),
    )(x, slab)
    # Slice the lane-/sublane-padding back off outside the kernel.
    return y[:n, :dims["outseq"]].astype(xa.dtype)


# ------------------------- parameter preparation (once) -------------------------

def fold_params(params):
    """One-time inference fold + packing into a single bf16 parameter slab.

    PyTorch forward (right-multiply form, x is (N, F)):
        a3 = (relu(xa W1a^T + b1a) W2a^T + b2a) Wfca^T + bfca        (branch A)
        b3 = (relu(xb W1b^T + b1b) W2b^T + b2b) Wfcb^T + bfcb        (branch B)
        m  = [a3 | b3] Wm^T + bm = a3 WmA^T + b3 WmB^T + bm          (merge)
        y  = ((m Wmfc^T + bmfc) Wf^T + bf)                           (tails)

    Everything after each ReLU is linear, so it folds to
        y = relu_A Wa + relu_B Wb + b_out
    which, with the first layers packed block-diagonally, is two dots.
    """
    A, B, M = params["A"], params["B"], params["merge"]
    outseq = A["fc_w"].shape[0]

    # Split the merge LazyLinear over the concat halves (no concat needed).
    wmA = M["lazy_w"][:, :outseq].T           # (outseq, hm)
    wmB = M["lazy_w"][:, outseq:].T           # (outseq, hm)

    # merge fc . MergeModel.fc
    wtail = _mm(M["fc_w"].T, params["fc_w"].T)                            # (hm, outseq)
    btail = _mm(M["fc_b"][None, :], params["fc_w"].T)[0] + params["fc_b"]

    def branch_fold(p, wm_half):
        t = _mm(_mm(p["fc_w"].T, wm_half), wtail)                         # (h2, outseq)
        w = _mm(p["l2_w"].T, t)                                           # (h1, outseq)
        b = (_mm(p["l2_b"][None, :], t)[0]
             + _mm(_mm(p["fc_b"][None, :], wm_half), wtail)[0])           # (outseq,)
        return w, b

    wa, ba = branch_fold(A, wmA)
    wb, bb = branch_fold(B, wmB)
    b_out = ba + bb + _mm(M["lazy_b"][None, :], wtail)[0] + btail         # (outseq,)

    in_a, h1a = A["l1_w"].shape[1], A["l1_w"].shape[0]
    in_b, h1b = B["l1_w"].shape[1], B["l1_w"].shape[0]
    in_cat = in_a + in_b
    H = h1a + h1b

    in_pad = _round_up(in_cat, 16)                  # bf16 sublane-tile aligned
    lanes = _round_up(max(H, outseq), 128)          # lane-dense slab / output width
    off_b1 = in_pad
    off_w2 = off_b1 + 16
    off_b2 = off_w2 + lanes
    rows = off_b2 + 16

    slab = jnp.zeros((rows, lanes), jnp.float32)
    # Block-diagonal first layer (branch A | branch B).
    slab = slab.at[0:in_a, 0:h1a].set(A["l1_w"].T)
    slab = slab.at[in_a:in_cat, h1a:H].set(B["l1_w"].T)
    slab = slab.at[off_b1, 0:h1a].set(A["l1_b"])
    slab = slab.at[off_b1, h1a:H].set(B["l1_b"])
    # Deep-folded post-ReLU -> output matrices, stacked over the branches.
    slab = slab.at[off_w2:off_w2 + h1a, 0:outseq].set(wa)
    slab = slab.at[off_w2 + h1a:off_w2 + H, 0:outseq].set(wb)
    slab = slab.at[off_b2, 0:outseq].set(b_out)

    dims = dict(in_cat=in_cat, in_pad=in_pad, lanes=lanes, outseq=outseq,
                off_b1=off_b1, off_w2=off_w2, off_b2=off_b2)
    return {"slab": slab.astype(jnp.bfloat16), "dims": dims}


# ----------------------------- init / reference -----------------------------

def init_linear(key, fan_in, fan_out):
    """Deterministic PyTorch-style Linear init (uniform +/- 1/sqrt(fan_in))."""
    kw, kb = jax.random.split(key)
    bound = 1.0 / float(fan_in) ** 0.5
    w = jax.random.uniform(kw, (fan_out, fan_in), jnp.float32, -bound, bound)
    b = jax.random.uniform(kb, (fan_out,), jnp.float32, -bound, bound)
    return w, b


def reference_forward(xlist, params):
    """Pure-jnp f32 reference replicating the PyTorch forward layer-by-layer."""
    def lin(x, w, b):
        return jnp.matmul(x, w.T, precision=_HI) + b

    def branch(x, p):
        h = jnp.maximum(lin(x, p["l1_w"], p["l1_b"]), 0.0)
        h = lin(h, p["l2_w"], p["l2_b"])
        return lin(h, p["fc_w"], p["fc_b"])

    a = branch(xlist[0], params["A"])
    b = branch(xlist[1], params["B"])
    x = jnp.concatenate([a, b], axis=1)
    x = lin(x, params["merge"]["lazy_w"], params["merge"]["lazy_b"])
    x = lin(x, params["merge"]["fc_w"], params["merge"]["fc_b"])
    return lin(x, params["fc_w"], params["fc_b"])


if __name__ == "__main__":
    # Concrete MergeModel config (mirrors the dict the platform would pass):
    #   cols['A'] : Linear(32->64), ReLU, Linear(64->48) + MainModel.fc Linear(48->outseq)
    #   cols['B'] : Linear(24->64), ReLU, Linear(64->48) + MainModel.fc Linear(48->outseq)
    #   mers      : cat(A, B) dim=1 -> LazyLinear(40) (== Linear(2*outseq -> 40))
    #                                + add_model.fc Linear(40->outseq)
    #   MergeModel.fc : LazyLinear(outseq) (== Linear(outseq -> outseq))
    outseq = 16
    batch = 4
    in_a, in_b = 32, 24
    h1, h2, hm = 64, 48, 40

    root = jax.random.PRNGKey(0)
    keys = jax.random.split(root, 12)

    params = {
        "A": dict(zip(
            ("l1_w", "l1_b", "l2_w", "l2_b", "fc_w", "fc_b"),
            (*init_linear(keys[0], in_a, h1),
             *init_linear(keys[1], h1, h2),
             *init_linear(keys[2], h2, outseq)))),
        "B": dict(zip(
            ("l1_w", "l1_b", "l2_w", "l2_b", "fc_w", "fc_b"),
            (*init_linear(keys[3], in_b, h1),
             *init_linear(keys[4], h1, h2),
             *init_linear(keys[5], h2, outseq)))),
        "merge": dict(zip(
            ("lazy_w", "lazy_b", "fc_w", "fc_b"),
            (*init_linear(keys[6], 2 * outseq, hm),
             *init_linear(keys[7], hm, outseq)))),
    }
    params["fc_w"], params["fc_b"] = init_linear(keys[8], outseq, outseq)

    xa = jax.random.normal(keys[9], (batch, in_a), jnp.float32)
    xb = jax.random.normal(keys[10], (batch, in_b), jnp.float32)
    xlist = [xa, xb]

    # One-time parameter preparation (fold + slab packing); the hot path is
    # exactly one pallas_call (2 input DMAs, 2 dots, 1 store) per forward.
    folded = fold_params(params)
    jax.block_until_ready(folded["slab"])

    out = merge_model_forward(xlist, folded)
    out = jax.block_until_ready(out)

    ref = reference_forward(xlist, params)
    assert out.shape == (batch, outseq), out.shape
    # bf16 MXU inputs + fp re-association of the fold => loosened (but still
    # structure-catching) tolerance vs. the exact f32 layer-by-layer reference.
    assert jnp.allclose(out, ref, rtol=2e-2, atol=2e-2), (
        "Pallas output mismatch: max abs err "
        f"{float(jnp.max(jnp.abs(out - ref)))}")

    print("KERNEL_OK")
</pallas_src>

<mosaic_0001>
module attributes {stable_mosaic.version = 11 : i64} {
  func.func @kernel(%arg0: i32, %arg1: memref<8x64xbf16, #tpu.memory_space<vmem>>, %arg2: memref<224x128xbf16, #tpu.memory_space<vmem>>, %arg3: memref<8x128xf32, #tpu.memory_space<vmem>>) attributes {dimension_semantics = [#tpu.dimension_semantics<arbitrary>], iteration_bounds = array<i64: 1>, scalar_prefetch = 0 : i64, scratch_operands = 0 : i64, tpu.core_type = #tpu.core_type<tc>, window_params = [{pipeline_mode = #tpu.pipeline_mode<synchronous>, transform_indices = @transform_0, window_bounds = array<i64: 8, 64>}, {pipeline_mode = #tpu.pipeline_mode<synchronous>, transform_indices = @transform_1, window_bounds = array<i64: 224, 128>}, {pipeline_mode = #tpu.pipeline_mode<synchronous>, transform_indices = @transform_2, window_bounds = array<i64: 8, 128>}]} {
    %c0 = arith.constant 0 : index
    %c0_0 = arith.constant 0 : index
    %0 = vector.load %arg2[%c0, %c0_0] : memref<224x128xbf16, #tpu.memory_space<vmem>>, vector<64x128xbf16>
    %c64 = arith.constant 64 : index
    %c0_1 = arith.constant 0 : index
    %1 = vector.load %arg2[%c64, %c0_1] : memref<224x128xbf16, #tpu.memory_space<vmem>>, vector<1x128xbf16>
    %2 = arith.extf %1 : vector<1x128xbf16> to vector<1x128xf32>
    %c80 = arith.constant 80 : index
    %c0_2 = arith.constant 0 : index
    %3 = vector.load %arg2[%c80, %c0_2] : memref<224x128xbf16, #tpu.memory_space<vmem>>, vector<128x128xbf16>
    %c208 = arith.constant 208 : index
    %c0_3 = arith.constant 0 : index
    %4 = vector.load %arg2[%c208, %c0_3] : memref<224x128xbf16, #tpu.memory_space<vmem>>, vector<1x128xbf16>
    %5 = arith.extf %4 : vector<1x128xbf16> to vector<1x128xf32>
    %c0_4 = arith.constant 0 : index
    %c0_5 = arith.constant 0 : index
    %6 = vector.load %arg1[%c0_4, %c0_5] : memref<8x64xbf16, #tpu.memory_space<vmem>>, vector<8x64xbf16>
    %cst = arith.constant dense<0.000000e+00> : vector<8x128xf32>
    %7 = tpu.matmul %6, %0, %cst {dimension_numbers = #tpu.dot_dimension_numbers<[1], [0], [0], [1], [0, 0, 1, 1], [], []>} : vector<8x64xbf16>, vector<64x128xbf16>, vector<8x128xf32> -> vector<8x128xf32>
    %8 = vector.broadcast %2 : vector<1x128xf32> to vector<8x128xf32>
    %9 = arith.addf %7, %8 : vector<8x128xf32>
    %cst_6 = arith.constant 0.000000e+00 : f32
    %10 = vector.broadcast %cst_6 : f32 to vector<8x128xf32>
    %11 = arith.maximumf %9, %10 : vector<8x128xf32>
    %12 = arith.truncf %11 : vector<8x128xf32> to vector<8x128xbf16>
    %cst_7 = arith.constant dense<0.000000e+00> : vector<8x128xf32>
    %13 = tpu.matmul %12, %3, %cst_7 {dimension_numbers = #tpu.dot_dimension_numbers<[1], [0], [0], [1], [0, 0, 1, 1], [], []>} : vector<8x128xbf16>, vector<128x128xbf16>, vector<8x128xf32> -> vector<8x128xf32>
    %14 = vector.broadcast %5 : vector<1x128xf32> to vector<8x128xf32>
    %15 = arith.addf %13, %14 : vector<8x128xf32>
    %c0_8 = arith.constant 0 : index
    %c0_9 = arith.constant 0 : index
    %16 = vector.load %arg3[%c0_8, %c0_9] : memref<8x128xf32, #tpu.memory_space<vmem>>, vector<8x128xf32>
    tpu.vector_store %arg3[%c0_8, %c0_9], %15 {strides = array<i32>} : memref<8x128xf32, #tpu.memory_space<vmem>>, vector<8x128xf32>,
    return
  }
  func.func @transform_0(%arg0: i32) -> (i32, i32) {
    %c0_i32 = arith.constant 0 : i32
    %c0_i32_0 = arith.constant 0 : i32
    %c0_i32_1 = arith.constant 0 : i32
    return %c0_i32, %c0_i32_0 : i32, i32
  }
  func.func @transform_1(%arg0: i32) -> (i32, i32) {
    %c0_i32 = arith.constant 0 : i32
    %c0_i32_0 = arith.constant 0 : i32
    %c0_i32_1 = arith.constant 0 : i32
    return %c0_i32, %c0_i32_0 : i32, i32
  }
  func.func @transform_2(%arg0: i32) -> (i32, i32) {
    %c0_i32 = arith.constant 0 : i32
    %c0_i32_0 = arith.constant 0 : i32
    %c0_i32_1 = arith.constant 0 : i32
    return %c0_i32, %c0_i32_0 : i32, i32
  }
}

</mosaic_0001>

<bundles_post_ra>
// kernel: tpu_custom_call.1
= control target key start
LH: loop header
LB: loop body
LE: loop exit
PB: predicated region body
PF: predicated region fallthrough
CT: control target
= control target key end

     0   :  { %7 = vsyncpa [#allocation3], 0  ;;  %s370_s0 = inlined_call_operand.hbm [shape: bf16[8,64], index: 0, kind: input, shape index: {}]   ;;  %s371_s1 = inlined_call_operand.hbm [shape: bf16[224,128], index: 1, kind: input, shape index: {}]   ;;  %s372_s2 = inlined_call_operand.hbm [shape: f32[8,128], index: 2, kind: output, shape index: {}]  }
   0x1   :  { %8 = vsyncpa [#allocation6], 0 }
   0x2   :  { %9 = vsyncpa [#allocation4], 0  ;;  %s15_s11 = sshll.u32 %s370_s0, 4  ;;  %s341_s12 = smov [#allocation2]   ;;  %s16_s11 = int_to_ptr.hbm [resolvable:$true] %s15_s11 }
   0x3   :  { %s17_s13 = sshll.u32 %s341_s12, 4  ;;  %s25_s16 = sshll.u32 %s371_s1, 4  ;;  %s18_s13 = int_to_ptr.vmem [resolvable:$true] %s17_s13  ;;  %s26_s16 = int_to_ptr.hbm [resolvable:$true] %s25_s16 }
   0x4   :  { %20 = dma.hbm_to_vmem [thread:$0]  %s16_s11, 64, %s18_s13, [#allocation3]  }
   0x5   :  { %s342_s17 = smov [#allocation5]   ;;  %s343_s19 = smov 64  }
   0x6   :  { %s27_s18 = sshll.u32 %s342_s17, 4  ;;  %s344_s20 = smov 4   ;;  %s28_s18 = int_to_ptr.vmem [resolvable:$true] %s27_s18 }
   0x7   :  { %33 = dma.hbm_to_vmem [thread:$0]  %s26_s16, 1792, %s28_s18, [#allocation6], %s343_s19, %s343_s19, %s344_s20  }
   0x8   :  { %335 = dma.done.wait [#allocation3], 64  }
   0x9   :  { %336 = vsyncadd [#allocation3], 4294967232 }
   0xa   :  { %337 = dma.done.wait [#allocation6], 1792  }
   0xb   :  { %338 = vsyncadd [#allocation6], 4294965504  ;;  %v249_v0 = vld [vmem:[#allocation5 + $0x18] sm:$0xff]  ;;  %v257_v1 = vld [vmem:[#allocation5 + $0x60] sm:$0xff]  ;;  %vm97_vm0 = vcmask 523264   ;;  %s345_s0 = smov [#allocation7]  }
   0xc   :  { %105 = vmatpush.bf16.msra.mxu0 %v249_v0  ;;  %v248_v2 = vld [vmem:[#allocation5 + $0x10] sm:$0xff]  ;;  %165 = vmatpush.bf16.msra.mxu1 %v257_v1  ;;  %v256_v3 = vld [vmem:[#allocation5 + $0x58] sm:$0xff]  ;;  %v247_v4 = vld [vmem:[#allocation5 + $0x8] sm:$0xff]  ;;  %s184_s1 = sshll.u32 %s345_s0, 4  ;;  %s186_s23 = sshll.u32 %s372_s2, 4  ;;  %s185_s1 = int_to_ptr.vmem [resolvable:$true] %s184_s1  ;;  %s187_s23 = int_to_ptr.hbm [resolvable:$true] %s186_s23 }
   0xd   :  { %v255_v5 = vld [vmem:[#allocation5 + $0x50] sm:$0xff]  ;;  %v246_v6 = vld [vmem:[#allocation5] sm:$0xff]  ;;  %v254_v7 = vld [vmem:[#allocation5 + $0x48] sm:$0xff] }
   0xe   :  { %v71_v8 = vld [vmem:[#allocation2] sm:$0xf]  ;;  %v253_v9 = vld [vmem:[#allocation5 + $0x40] sm:$0xff]  ;;  %v251_v11 = vld [vmem:[#allocation5 + $0x30] sm:$0xff] }
   0xf   :  { %v252_v10 = vld [vmem:[#allocation5 + $0x38] sm:$0xff]  ;;  %v250_v12 = vld [vmem:[#allocation5 + $0x28] sm:$0xff]  ;;  %v51_v13 = vld [vmem:[#allocation5 + $0x20] sm:$0x1] }
  0x10   :  { %106 = vmatpush.bf16.msra.mxu0 %v248_v2  ;;  %166 = vmatpush.bf16.msra.mxu1 %v256_v3  ;;  %v52_v14 = vunpack.c.l.bf16 %v51_v13  ;;  %v69_v21 = vld [vmem:[#allocation5 + $0x68] sm:$0x1] }
  0x11   :  { %v70_v22 = vunpack.c.l.bf16 %v69_v21 }
  0x12   :  { %v72_v15 = vperm.slane %v52_v14, 0 }
  0x13   :  { %v116_v23 = vperm.slane %v70_v22, 0 }
  0x14   :  { %107 = vmatpush.bf16.msra.mxu0 %v247_v4  ;;  %167 = vmatpush.bf16.msra.mxu1 %v255_v5 }
  0x18   :  { %108 = vmatpush.bf16.msra.mxu0 %v246_v6  ;;  %168 = vmatpush.bf16.msra.mxu1 %v254_v7 }
  0x1b   :  { %213 = vmatmul.msk.bf16.vlgmr.msra.gmra.mxu0 %vm97_vm0, %v71_v8 }
  0x1c   :  { %169 = vmatpush.bf16.msra.mxu1 %v253_v9 }
  0x20   :  { %170 = vmatpush.bf16.msra.mxu1 %v252_v10 }
  0x24   :  { %171 = vmatpush.bf16.msra.mxu1 %v251_v11 }
  0x28   :  { %172 = vmatpush.bf16.msra.mxu1 %v250_v12 }
  0x98   :  { %v110_v16 = vpop.f32.mrf.mxu0 }
  0x99   :  { %v111_v17 = vadd.f32 %v110_v16, %v72_v15 }
  0x9b   :  { %v114_v18 = vmax.f32 %v111_v17, 0.0 }
  0x9d   :  { %v115_v19 = vpack.c.bf16 %v114_v18, %v114_v18 }
  0x9f   :  { %173 = vmatmul.bf16.vlgmr.msra.gmra.mxu1 %v115_v19 }
  0xa0   :  { %v112_v20 = vpop.f32.mrf.mxu0 }
 0x11c   :  { %v174_v24 = vpop.f32.mrf.mxu1 }
 0x11d   :  { %v175_v25 = vadd.f32 %v174_v24, %v116_v23 }
 0x11f   :  { %178 = vst [vmem:[#allocation7] sm:$0xff] %v175_v25 }
 0x120   :  { %189 = dma.vmem_to_hbm [thread:$0]  %s185_s1, 128, %s187_s23, [#allocation4]  }
 0x124   :  { %v176_v26 = vpop.f32.mrf.mxu1 }
 0x125   :  { %339 = dma.done.wait [#allocation4], 128  }
 0x126   :  { %340 = vsyncadd [#allocation4], 4294967168 }
 0x127   :  { %194 = vsyncpa [#allocation3], 1 }
 0x128   :  { %195 = vsyncpa [#allocation6], 1 }
 0x129   :  { %196 = vsyncpa [#allocation4], 1 }

</bundles_post_ra>
